<compile_context>
chip_gen: v6e
topology: v6e:2x2x1
jax: 0.10.0
libtpu: 0.0.40
codegen_flags: <defaults>
</compile_context>

<pallas_src>
import functools
import math

import jax
import jax.numpy as jnp
from jax import lax
from jax.experimental import pallas as pl
from jax.experimental.pallas import tpu as pltpu


_VMEM_LIMIT_BYTES = 32 * 1024 * 1024     # safe request on v5e/v6e/v7x
_FUSED_SLAB_BUDGET = 6 * 1024 * 1024     # per-buffer slab; ~4x (dbl-buf in+out) < 24 MiB
_TILE_BUDGET_BYTES = 2 * 1024 * 1024     # per (C, TL) tile in the two-pass fallback


def _round_up(a, m):
    return ((a + m - 1) // m) * m


def _choose_tl(C, L, itemsize):
    """Largest lane tile TL (multiple of 128) with C*TL*itemsize <= budget.

    Returns (TL, needs_mask).  needs_mask=True means L is not evenly covered and the
    reduction kernel must mask the padded lanes of the tail tile.
    """
    max_tl = max(128, (_TILE_BUDGET_BYTES // max(1, C * itemsize)) // 128 * 128)
    if L % 128 == 0:
        for t in range(min(max_tl, L), 127, -128):
            if L % t == 0:
                return t, False
    # No multiple of 128 that divides L fits -> cdiv grid with masked tail tile.
    return min(max_tl, _round_up(L, 128)), True


# --------------------------- fused single-pass kernel ------------------------

def _fused_ca_kernel(x_ref, w1_ref, w2_ref, o_ref, *, inv_l):
    """Whole (C, L) slab resident: pool + shared MLP + sigmoid + apply in one pass."""
    x = x_ref[...].astype(jnp.float32)                                  # (C, L)
    avg = jnp.sum(x, axis=1, keepdims=True) * inv_l                     # (C, 1)
    mx = jnp.max(x, axis=1, keepdims=True)                              # (C, 1)
    pooled = jnp.concatenate([avg, mx], axis=1)                         # (C, 2)
    h = jnp.maximum(
        jnp.dot(w1_ref[...], pooled, preferred_element_type=jnp.float32), 0.0)  # (Ch, 2)
    h1 = jnp.sum(h, axis=1, keepdims=True)                              # (Ch, 1)
    out = jnp.dot(w2_ref[...], h1, preferred_element_type=jnp.float32)  # (C, 1)
    gate = 1.0 + jax.nn.sigmoid(out)                                    # x*sig(out)+x
    o_ref[...] = (x * gate).astype(o_ref.dtype)


# --------------------------- two-pass fallback kernels ------------------------

def _pool_gate_kernel(x_ref, w1_ref, w2_ref, gate_ref, sum_s, max_s, *,
                      inv_l, L, TL, needs_mask):
    """Adaptive avg/max pool over lanes + shared 1x1-conv MLP + sigmoid.

    gate_ref gets 1 + sigmoid(mlp(avg) + mlp(max)) so the apply pass is one multiply.
    """
    l = pl.program_id(1)

    @pl.when(l == 0)
    def _():
        sum_s[...] = jnp.zeros_like(sum_s)
        max_s[...] = jnp.full_like(max_s, -jnp.inf)

    xt = x_ref[...].astype(jnp.float32)                                 # (C, TL)
    if needs_mask:
        lane = lax.broadcasted_iota(jnp.int32, xt.shape, 1) + l * TL
        valid = lane < L
        xs = jnp.where(valid, xt, 0.0)
        xm = jnp.where(valid, xt, -jnp.inf)
    else:
        xs = xm = xt
    sum_s[...] += jnp.sum(xs, axis=1, keepdims=True)
    max_s[...] = jnp.maximum(max_s[...], jnp.max(xm, axis=1, keepdims=True))

    @pl.when(l == pl.num_programs(1) - 1)
    def _():
        avg = sum_s[...] * inv_l                                        # (C, 1)
        pooled = jnp.concatenate([avg, max_s[...]], axis=1)             # (C, 2)
        h = jnp.maximum(
            jnp.dot(w1_ref[...], pooled, preferred_element_type=jnp.float32),
            0.0)                                                        # (Ch, 2)
        h1 = jnp.sum(h, axis=1, keepdims=True)                          # (Ch, 1)
        out = jnp.dot(w2_ref[...], h1, preferred_element_type=jnp.float32)
        gate_ref[...] = 1.0 + jax.nn.sigmoid(out)                       # 1 + sigmoid


def _apply_gate_kernel(x_ref, gate_ref, o_ref):
    # y = x * sigmoid(out) + x == x * gate with gate = 1 + sigmoid(out).
    o_ref[...] = (x_ref[...].astype(jnp.float32) * gate_ref[...]).astype(o_ref.dtype)


# --------------------------------- wrapper -----------------------------------

def ca_forward(x, w1, w2):
    """x: (B, C, H, W); w1: (C//r, C); w2: (C, C//r)."""
    B, C, H, W = x.shape
    L = H * W
    Ch = w1.shape[0]
    itemsize = jnp.dtype(x.dtype).itemsize
    inv_l = 1.0 / L
    x3 = x.reshape(B, C, L)  # contiguous reshape, no data movement

    slab_bytes = C * L * itemsize
    if slab_bytes <= _FUSED_SLAB_BUDGET:
        # Fused path: 1 read + 1 write of x.
        y3 = pl.pallas_call(
            functools.partial(_fused_ca_kernel, inv_l=inv_l),
            out_shape=jax.ShapeDtypeStruct((B, C, L), x.dtype),
            grid=(B,),
            in_specs=[
                pl.BlockSpec((None, C, L), lambda b: (b, 0, 0)),
                pl.BlockSpec((Ch, C), lambda b: (0, 0)),
                pl.BlockSpec((C, Ch), lambda b: (0, 0)),
            ],
            out_specs=pl.BlockSpec((None, C, L), lambda b: (b, 0, 0)),
            compiler_params=pltpu.CompilerParams(
                dimension_semantics=("parallel",),
                vmem_limit_bytes=_VMEM_LIMIT_BYTES),
        )(x3, w1, w2)
        return y3.reshape(B, C, H, W)

    # Fallback two-pass path for slabs too large to keep resident.
    TL, needs_mask = _choose_tl(C, L, itemsize)
    nL = pl.cdiv(L, TL)

    gate = pl.pallas_call(
        functools.partial(_pool_gate_kernel, inv_l=inv_l, L=L, TL=TL,
                          needs_mask=needs_mask),
        out_shape=jax.ShapeDtypeStruct((B, C, 1), jnp.float32),
        grid=(B, nL),
        in_specs=[
            pl.BlockSpec((None, C, TL), lambda b, l: (b, 0, l)),
            pl.BlockSpec((Ch, C), lambda b, l: (0, 0)),
            pl.BlockSpec((C, Ch), lambda b, l: (0, 0)),
        ],
        out_specs=pl.BlockSpec((None, C, 1), lambda b, l: (b, 0, 0)),
        scratch_shapes=[pltpu.VMEM((C, 1), jnp.float32),
                        pltpu.VMEM((C, 1), jnp.float32)],
        compiler_params=pltpu.CompilerParams(
            dimension_semantics=("parallel", "arbitrary"),
            vmem_limit_bytes=_VMEM_LIMIT_BYTES),
    )(x3, w1, w2)

    y3 = pl.pallas_call(
        _apply_gate_kernel,
        out_shape=jax.ShapeDtypeStruct((B, C, L), x.dtype),
        grid=(B, nL),
        in_specs=[
            pl.BlockSpec((None, C, TL), lambda b, l: (b, 0, l)),
            pl.BlockSpec((None, C, 1), lambda b, l: (b, 0, 0)),
        ],
        out_specs=pl.BlockSpec((None, C, TL), lambda b, l: (b, 0, l)),
        compiler_params=pltpu.CompilerParams(
            dimension_semantics=("parallel", "parallel"),
            vmem_limit_bytes=_VMEM_LIMIT_BYTES),
    )(x3, gate)

    return y3.reshape(B, C, H, W)


# ----------------------------- pure-JAX reference ----------------------------

def ca_reference(x, w1, w2):
    avg = jnp.mean(x, axis=(2, 3))                  # (B, C)
    mx = jnp.max(x, axis=(2, 3))                    # (B, C)

    def mlp(v):
        return jnp.maximum(v @ w1.T, 0.0) @ w2.T    # (B, C)

    gate = jax.nn.sigmoid(mlp(avg) + mlp(mx))       # (B, C)
    return x * gate[:, :, None, None] + x


# ----------------------------------- main ------------------------------------

if __name__ == "__main__":
    B, C, H, W = 2, 32, 16, 16
    reduction = 4
    Ch = C // reduction

    key = jax.random.PRNGKey(0)
    kx, k1, k2 = jax.random.split(key, 3)
    x = jax.random.normal(kx, (B, C, H, W), dtype=jnp.float32)
    s1 = 1.0 / math.sqrt(C)
    w1 = jax.random.uniform(k1, (Ch, C), jnp.float32, -s1, s1)
    s2 = 1.0 / math.sqrt(Ch)
    w2 = jax.random.uniform(k2, (C, Ch), jnp.float32, -s2, s2)

    out = jax.jit(ca_forward)(x, w1, w2)
    jax.block_until_ready(out)
    assert out.shape == (B, C, H, W), out.shape

    ref = ca_reference(x, w1, w2)
    err = float(jnp.max(jnp.abs(out - ref)))
    assert err < 1e-4, f"max abs err vs reference: {err}"
    print("KERNEL_OK")
</pallas_src>

<mosaic_0001>
module attributes {stable_mosaic.version = 11 : i64} {
  func.func @_fused_ca_kernel(%arg0: i32, %arg1: memref<1x32x256xf32, #tpu.memory_space<vmem>>, %arg2: memref<8x32xf32, #tpu.memory_space<vmem>>, %arg3: memref<32x8xf32, #tpu.memory_space<vmem>>, %arg4: memref<1x32x256xf32, #tpu.memory_space<vmem>>) attributes {dimension_semantics = [#tpu.dimension_semantics<parallel>], iteration_bounds = array<i64: 2>, scalar_prefetch = 0 : i64, scratch_operands = 0 : i64, tpu.core_type = #tpu.core_type<tc>, window_params = [{transform_indices = @transform_0, window_bounds = array<i64: 1, 32, 256>}, {pipeline_mode = #tpu.pipeline_mode<synchronous>, transform_indices = @transform_1, window_bounds = array<i64: 8, 32>}, {pipeline_mode = #tpu.pipeline_mode<synchronous>, transform_indices = @transform_2, window_bounds = array<i64: 32, 8>}, {transform_indices = @transform_3, window_bounds = array<i64: 1, 32, 256>}]} {
    %c0 = arith.constant 0 : index
    %c0_0 = arith.constant 0 : index
    %c0_1 = arith.constant 0 : index
    %0 = vector.load %arg1[%c0, %c0_0, %c0_1] : memref<1x32x256xf32, #tpu.memory_space<vmem>>, vector<1x32x256xf32>
    %1 = vector.shape_cast %0 : vector<1x32x256xf32> to vector<32x256xf32>
    %cst = arith.constant dense<0.000000e+00> : vector<32xf32>
    %2 = vector.multi_reduction <add>, %1, %cst [1] : vector<32x256xf32> to vector<32xf32>
    %3 = vector.shape_cast %2 : vector<32xf32> to vector<32x1xf32>
    %cst_2 = arith.constant 3.906250e-03 : f32
    %4 = vector.broadcast %cst_2 : f32 to vector<32x1xf32>
    %5 = arith.mulf %3, %4 : vector<32x1xf32>
    %cst_3 = arith.constant dense<0xFF800000> : vector<32xf32>
    %6 = vector.multi_reduction <maximumf>, %1, %cst_3 [1] : vector<32x256xf32> to vector<32xf32>
    %7 = vector.shape_cast %6 : vector<32xf32> to vector<32x1xf32>
    %8 = tpu.concatenate %5, %7 in 1 : vector<32x1xf32>, vector<32x1xf32> -> vector<32x2xf32>
    %c0_4 = arith.constant 0 : index
    %c0_5 = arith.constant 0 : index
    %9 = vector.load %arg2[%c0_4, %c0_5] : memref<8x32xf32, #tpu.memory_space<vmem>>, vector<8x32xf32>
    %cst_6 = arith.constant dense<0.000000e+00> : vector<8x2xf32>
    %10 = tpu.matmul %9, %8, %cst_6 {dimension_numbers = #tpu.dot_dimension_numbers<[1], [0], [0], [1], [0, 0, 1, 1], [], []>} : vector<8x32xf32>, vector<32x2xf32>, vector<8x2xf32> -> vector<8x2xf32>
    %cst_7 = arith.constant 0.000000e+00 : f32
    %11 = vector.broadcast %cst_7 : f32 to vector<8x2xf32>
    %12 = arith.maximumf %10, %11 : vector<8x2xf32>
    %cst_8 = arith.constant dense<0.000000e+00> : vector<8xf32>
    %13 = vector.multi_reduction <add>, %12, %cst_8 [1] : vector<8x2xf32> to vector<8xf32>
    %14 = vector.shape_cast %13 : vector<8xf32> to vector<8x1xf32>
    %c0_9 = arith.constant 0 : index
    %c0_10 = arith.constant 0 : index
    %15 = vector.load %arg3[%c0_9, %c0_10] : memref<32x8xf32, #tpu.memory_space<vmem>>, vector<32x8xf32>
    %cst_11 = arith.constant dense<0.000000e+00> : vector<32x1xf32>
    %16 = tpu.matmul %15, %14, %cst_11 {dimension_numbers = #tpu.dot_dimension_numbers<[1], [0], [0], [1], [0, 0, 1, 1], [], []>} : vector<32x8xf32>, vector<8x1xf32>, vector<32x1xf32> -> vector<32x1xf32>
    %17 = arith.negf %16 : vector<32x1xf32>
    %18 = math.exp %17 : vector<32x1xf32>
    %cst_12 = arith.constant 1.000000e+00 : f32
    %19 = vector.broadcast %cst_12 : f32 to vector<32x1xf32>
    %20 = arith.addf %19, %18 : vector<32x1xf32>
    %21 = arith.divf %19, %20 : vector<32x1xf32>
    %cst_13 = arith.constant 1.000000e+00 : f32
    %22 = vector.broadcast %cst_13 : f32 to vector<32x1xf32>
    %23 = arith.addf %22, %21 : vector<32x1xf32>
    %24 = vector.broadcast %23 : vector<32x1xf32> to vector<32x256xf32>
    %25 = arith.mulf %1, %24 : vector<32x256xf32>
    %c0_14 = arith.constant 0 : index
    %c0_15 = arith.constant 0 : index
    %c0_16 = arith.constant 0 : index
    %26 = vector.load %arg4[%c0_14, %c0_15, %c0_16] : memref<1x32x256xf32, #tpu.memory_space<vmem>>, vector<1x32x256xf32>
    %27 = vector.shape_cast %26 : vector<1x32x256xf32> to vector<32x256xf32>
    %28 = vector.shape_cast %25 : vector<32x256xf32> to vector<1x32x256xf32>
    tpu.vector_store %arg4[%c0_14, %c0_15, %c0_16], %28 {strides = array<i32>} : memref<1x32x256xf32, #tpu.memory_space<vmem>>, vector<1x32x256xf32>,
    return
  }
  func.func @transform_0(%arg0: i32) -> (i32, i32, i32) {
    %c0_i32 = arith.constant 0 : i32
    %c0_i32_0 = arith.constant 0 : i32
    %c0_i32_1 = arith.constant 0 : i32
    return %arg0, %c0_i32, %c0_i32_0 : i32, i32, i32
  }
  func.func @transform_1(%arg0: i32) -> (i32, i32) {
    %c0_i32 = arith.constant 0 : i32
    %c0_i32_0 = arith.constant 0 : i32
    %c0_i32_1 = arith.constant 0 : i32
    return %c0_i32, %c0_i32_0 : i32, i32
  }
  func.func @transform_2(%arg0: i32) -> (i32, i32) {
    %c0_i32 = arith.constant 0 : i32
    %c0_i32_0 = arith.constant 0 : i32
    %c0_i32_1 = arith.constant 0 : i32
    return %c0_i32, %c0_i32_0 : i32, i32
  }
  func.func @transform_3(%arg0: i32) -> (i32, i32, i32) {
    %c0_i32 = arith.constant 0 : i32
    %c0_i32_0 = arith.constant 0 : i32
    %c0_i32_1 = arith.constant 0 : i32
    return %arg0, %c0_i32, %c0_i32_0 : i32, i32, i32
  }
}

</mosaic_0001>

<bundles_post_ra>
// kernel: ca_forward.1
= control target key start
LH: loop header
LB: loop body
LE: loop exit
PB: predicated region body
PF: predicated region fallthrough
CT: control target
= control target key end

     0   :  { %s624_s12 = smov 0   ;;  %s707_s0 = inlined_call_operand.vmem [shape: f32[2,32,256], index: 0, kind: input, shape index: {}]   ;;  %s708_s1 = inlined_call_operand.vmem [shape: f32[8,32], index: 1, kind: input, shape index: {}]   ;;  %s709_s2 = inlined_call_operand.vmem [shape: f32[32,8], index: 2, kind: input, shape index: {}]   ;;  %s710_s3 = inlined_call_operand.vmem [shape: f32[2,32,256], index: 3, kind: output, shape index: {}]  }
   0x1 LB: > { %s513_s13 = sadd.s32 4294967295, %s599_s12   ;;  %p517_p0 = scmp.ge.s32.totalorder %s599_s12, 1  ;;  %s599_s12 = sphi %s624_s12, %s13_s12  }
   0x2   : > { %p137_p1 = scmp.lt.s32.totalorder %s599_s12, 3 }
   0x4   : > { %p138_p2 = pnand %p517_p0, %p137_p1 }
   0x5   : > { %p161_p3 = scmp.lt.s32.totalorder (!%p138_p2), %s513_s13, 1 }
   0x6   : > { %141 = sbr.rel (%p138_p2) target bundleno = 871 (0x367), region = 32 }
   0xb   : > { %s712_s13 = smov (!%p161_p3, %s513_s13), 1  ;;  %v601_v16 = vmov 0.0   ;;  %vm602_vm0 = vmmov 0   ;;  %vm207_vm1 = vcmask 7168   ;;  %v212_v32 = vld [vmem:[%s708_s1] sm:$0xff]  ;;  %vm213_vm2 = vcmask 261120  }
   0xc   : > { %s533_s14 = sshll.u32 %s712_s13, 6  ;;  %545 = vmatprep.subr.mxu0 %v601_v16  ;;  %553 = vmatprep.mubr.msk.f32.mxu0 %vm602_vm0, %v601_v16  ;;  %vm288_vm3 = vcmask 15360   ;;  %v292_v38 = vld [vmem:[%s709_s2] sm:$0xff]  ;;  %vm296_vm4 = vcmask 64512   ;;  %v293_v40 = vld [vmem:[%s709_s2 + $0x8] sm:$0xff]  ;;  %v294_v41 = vld [vmem:[%s709_s2 + $0x10] sm:$0xff] }
   0xd   : > { %s165_s17 = scalar_lea.vmem %s707_s0, %s533_s14  ;;  %558 = vmatprep.mubr.msk.f32.mxu1 %vm296_vm4, %v292_v38  ;;  %v295_v42 = vld [vmem:[%s709_s2 + $0x18] sm:$0xff]  ;;  %v603_v43 = vmov 0   ;;  %s170_s30 = scalar_lea.vmem %s710_s3, %s533_s14 }
   0xe   : > { %v640_v0 = vld [vmem:[%s165_s17 + $0x30] sm:$0xff]  ;;  %v642_v1 = vld [vmem:[%s165_s17 + $0x38] sm:$0xff]  ;;  %v644_v2 = vld [vmem:[%s165_s17 + $0x20] sm:$0xff]  ;;  %576 = vset.pattern.permute.xlu0 %v603_v43  ;;  %575 = vset.pattern.permute.xlu1 %v603_v43 }
   0xf   : > { %v204_v3 = vmax.f32 %v640_v0, %v642_v1  ;;  %v188_v4 = vadd.f32 %v642_v1, %v640_v0  ;;  %v650_v5 = vld [vmem:[%s165_s17 + $0x28] sm:$0xff]  ;;  %v652_v6 = vld [vmem:[%s165_s17 + $0x10] sm:$0xff]  ;;  %v654_v7 = vld [vmem:[%s165_s17 + $0x18] sm:$0xff] }
  0x10   : > { %v185_v8 = vadd.f32 %v650_v5, %v644_v2  ;;  %v182_v9 = vadd.f32 %v654_v7, %v652_v6  ;;  %v660_v10 = vld [vmem:[%s165_s17] sm:$0xff]  ;;  %v662_v11 = vld [vmem:[%s165_s17 + $0x8] sm:$0xff]  ;;  %v201_v12 = vmax.f32 %v644_v2, %v650_v5  ;;  %v198_v14 = vmax.f32 %v652_v6, %v654_v7 }
  0x11   : > { %205 = vmax.xlane.f32.xlu1 %v204_v3  ;;  %189 = vadd.xlane.f32.xlu0 %v188_v4  ;;  %v179_v13 = vadd.f32 %v662_v11, %v660_v10  ;;  %v195_v15 = vmax.f32 %v660_v10, %v662_v11 }
  0x15   : > { %186 = vadd.xlane.f32.xlu0 %v185_v8  ;;  %183 = vadd.xlane.f32.xlu1 %v182_v9 }
  0x19   : > { %202 = vmax.xlane.f32.xlu0 %v201_v12  ;;  %180 = vadd.xlane.f32.xlu1 %v179_v13 }
  0x1d   : > { %199 = vmax.xlane.f32.xlu0 %v198_v14  ;;  %196 = vmax.xlane.f32.xlu1 %v195_v15 }
  0x9a   : > { %v206_v17 = vpop.xlane.xlu1 %205  ;;  %v190_v18 = vpop.xlane.xlu0 %189 }
  0x9b   : > { %v194_v19 = vmul.f32 0.00390625, %v190_v18 }
  0x9d   : > { %v211_v20 = vsel %vm207_vm1, %v194_v19, %v206_v17 }
  0x9e   : > { %546 = vmatpush3.msra.mxu0 %v211_v20  ;;  %v187_v21 = vpop.xlane.xlu0 %186  ;;  %v184_v22 = vpop.xlane.xlu1 %183 }
  0x9f   : > { %547 = vmatprep.subr.mxu0 %v601_v16  ;;  %v193_v23 = vmul.f32 0.00390625, %v187_v21  ;;  %v192_v27 = vmul.f32 0.00390625, %v184_v22 }
  0xa2   : > { %v203_v24 = vpop.xlane.xlu0 %202  ;;  %v181_v25 = vpop.xlane.xlu1 %180 }
  0xa3   : > { %v210_v26 = vsel %vm207_vm1, %v193_v23, %v203_v24  ;;  %v191_v28 = vmul.f32 0.00390625, %v181_v25 }
  0xa4   : > { %548 = vmatpush3.msra.mxu0 %v210_v26 }
  0xa5   : > { %549 = vmatprep.subr.mxu0 %v601_v16 }
  0xa6   : > { %v200_v29 = vpop.xlane.xlu0 %199  ;;  %v197_v30 = vpop.xlane.xlu1 %196 }
  0xa7   : > { %v209_v31 = vsel %vm207_vm1, %v192_v27, %v200_v29  ;;  %v208_v33 = vsel %vm207_vm1, %v191_v28, %v197_v30 }
  0xa8   : > { %550 = vmatpush3.msra.mxu0 %v209_v31 }
  0xa9   : > { %551 = vmatprep.subr.mxu0 %v601_v16 }
  0xaa   : > { %552 = vmatpush3.msra.mxu0 %v208_v33 }
  0xab   : > { %554 = vmatmul.mubr.msk.f32.vlgmr.msra.gmra.mxu0 %vm213_vm2, %v212_v32 }
 0x16b   : > { %v283_v34 = vpop.f32.mrf.mxu0 }
 0x16c   : > { %v287_v35 = vmax.f32 %v283_v34, 0.0 }
 0x16d   : > { %v555_v36 = vpop.f32.mrf.mxu0 }
 0x16e   : > { %v289_v37 = vsel %vm288_vm3, %v287_v35, 0.0 }
 0x16f   : > { %290 = vadd.xlane.f32.xlu0 %v289_v37 }
 0x1f8   : > { %v291_v39 = vpop.xlane.xlu0 %290 }
 0x1f9   : > { %556 = vmatprep.subr.mxu1 %v291_v39 }
 0x1fa   : > { %557 = vmatpush3.msra.mxu1 %v291_v39 }
 0x1fb   : > { %559 = vmatmul.mubr.msk.f32.vlgmr.msra.gmra.mxu1 %vm296_vm4, %v293_v40 }
 0x1fc   : > { %561 = vmatprep.mubr.msk.f32.mxu1 %vm296_vm4, %v294_v41 }
 0x1ff   : > { %562 = vmatmul.mubr.msk.f32.gmra.mxu1 %vm296_vm4, %v295_v42 }
 0x2bb   : > { %v560_v44 = vpop.f32.mrf.mxu1 }
 0x2bc   : > { %v528_v45 = vmul.f32 -1.442695, %v560_v44 }
 0x2bd   : > { %v375_v46 = vpop.f32.mrf.mxu1 }
 0x2be   : > { %577 = vpow2.f32 %v528_v45  ;;  %v527_v47 = vmul.f32 -1.442695, %v375_v46 }
 0x2bf   : > { %v563_v48 = vpop.f32.mrf.mxu1 }
 0x2c0   : > { %579 = vpow2.f32 %v527_v47  ;;  %v530_v49 = vmul.f32 -1.442695, %v563_v48 }
 0x2c1   : > { %v385_v50 = vpop.f32.mrf.mxu1 }
 0x2c2   : > { %581 = vpow2.f32 %v530_v49  ;;  %v529_v51 = vmul.f32 -1.442695, %v385_v50 }
 0x2c4   : > { %583 = vpow2.f32 %v529_v51 }
 0x2cb   : > { %v578_v52 = vpop.eup %577 }
 0x2cc   : > { %v407_v53 = vadd.f32 1.0, %v578_v52 }
 0x2cd   : > { %v580_v54 = vpop.eup %579 }
 0x2ce   : > { %585 = vrcp.f32 %v407_v53  ;;  %v406_v55 = vadd.f32 1.0, %v580_v54 }
 0x2cf   : > { %v582_v56 = vpop.eup %581 }
 0x2d0   : > { %587 = vrcp.f32 %v406_v55  ;;  %v409_v58 = vadd.f32 1.0, %v582_v56 }
 0x2d1   : > { %v584_v57 = vpop.eup %583 }
 0x2d2   : > { %v408_v59 = vadd.f32 1.0, %v584_v57 }
 0x2d4   : > { %589 = vrcp.f32 %v408_v59 }
 0x2d5   : > { %591 = vrcp.f32 %v409_v58 }
 0x2db   : > { %v586_v60 = vpop.eup %585 }
 0x2dc   : > { %v419_v61 = vadd.f32 1.0, %v586_v60 }
 0x2dd   : > { %v588_v62 = vpop.eup %587 }
 0x2de   : > { %429 = vperm.xlu0 %576, %v419_v61   ;;  %v418_v63 = vadd.f32 1.0, %v588_v62 }
 0x2e0   : > { %424 = vperm.xlu1 %575, %v418_v63  }
 0x2e1   : > { %v590_v3 = vpop.eup %589 }
 0x2e2   : > { %v420_v4 = vadd.f32 1.0, %v590_v3  ;;  %v592_v8 = vpop.eup %591 }
 0x2e3   : > { %v421_v9 = vadd.f32 1.0, %v592_v8 }
 0x2e4   : > { %434 = vperm.xlu1 %575, %v420_v4  }
 0x2e8   : > { %439 = vperm.xlu1 %575, %v421_v9  }
 0x359   : > { %v430_v12 = vpop.permute.xlu0 %429 }
 0x35a   : > { %v444_v13 = vmul.f32 %v430_v12, %v652_v6  ;;  %v445_v14 = vmul.f32 %v430_v12, %v654_v7 }
 0x35b   : > { %v425_v15 = vpop.permute.xlu1 %424 }
 0x35c   : > { %452 = vst [vmem:[%s170_s30 + $0x10] sm:$0xff] %v444_v13  ;;  %453 = vst [vmem:[%s170_s30 + $0x18] sm:$0xff] %v445_v14  ;;  %v442_v16 = vmul.f32 %v425_v15, %v660_v10  ;;  %v443_v17 = vmul.f32 %v425_v15, %v662_v11 }
 0x35e   : > { %450 = vst [vmem:[%s170_s30] sm:$0xff] %v442_v16  ;;  %451 = vst [vmem:[%s170_s30 + $0x8] sm:$0xff] %v443_v17 }
 0x35f   : > { %v435_v18 = vpop.permute.xlu1 %434 }
 0x360   : > { %v446_v19 = vmul.f32 %v435_v18, %v644_v2  ;;  %v447_v20 = vmul.f32 %v435_v18, %v650_v5 }
 0x362   : > { %454 = vst [vmem:[%s170_s30 + $0x20] sm:$0xff] %v446_v19  ;;  %455 = vst [vmem:[%s170_s30 + $0x28] sm:$0xff] %v447_v20 }
 0x363   : > { %v440_v21 = vpop.permute.xlu1 %439 }
 0x364   : > { %v448_v6 = vmul.f32 %v440_v21, %v640_v0  ;;  %v449_v7 = vmul.f32 %v440_v21, %v642_v1 }
 0x366   : > { %456 = vst [vmem:[%s170_s30 + $0x30] sm:$0xff] %v448_v6  ;;  %457 = vst [vmem:[%s170_s30 + $0x38] sm:$0xff] %v449_v7 }
 0x367 PF: > { %s13_s12 = sadd.s32 1, %s599_s12  }
 0x368   : > { %p10_p4 = scmp.ge.s32.totalorder %s13_s12, 4  }
 0x36a   :  { %12 = sbr.rel (!%p10_p4) target bundleno = 1 (0x1), region = 62 }

</bundles_post_ra>
